<compile_context>
chip_gen: v7x
topology: tpu7x:2x2x1
jax: 0.10.0
libtpu: 0.0.40
codegen_flags: <defaults>
</compile_context>

<pallas_src>
import functools

import jax
import jax.numpy as jnp
from jax.experimental import pallas as pl
from jax.experimental.pallas import tpu as pltpu


# ---------------------------------------------------------------------------
# Kernels
# ---------------------------------------------------------------------------

def _gct_fused_kernel(x_ref, p_ref, o_ref, *, epsilon, mode, after_relu):
    """Whole (nb, C, HW) block resident: reduce over HW, gate, rescale."""
    xf = x_ref[...].astype(jnp.float32)                       # transient f32
    if mode == 'l2':
        s = jnp.sum(xf * xf, axis=-1, keepdims=True)          # (nb, C, 1)
    else:  # 'l1'
        xin = xf if after_relu else jnp.abs(xf)
        s = jnp.sum(xin, axis=-1, keepdims=True)               # (nb, C, 1)

    alpha = p_ref[:, 0:1]                                      # (C, 1) f32
    gamma = p_ref[:, 1:2]
    beta = p_ref[:, 2:3]

    if mode == 'l2':
        embedding = jnp.sqrt(s + epsilon) * alpha                              # (nb, C, 1)
        mean_sq = jnp.mean(embedding * embedding, axis=1, keepdims=True)       # (nb, 1, 1)
        norm = gamma * jax.lax.rsqrt(mean_sq + epsilon)                        # (nb, C, 1)
    else:
        embedding = s * alpha
        mean_abs = jnp.mean(jnp.abs(embedding), axis=1, keepdims=True)
        norm = gamma / (mean_abs + epsilon)

    gate = 1.0 + jnp.tanh(embedding * norm + beta)                             # (nb, C, 1)
    # Re-read x_ref at the store: no block-sized f32 temporary stays live and
    # the dominant elementwise rescale runs in the input dtype.
    o_ref[...] = (x_ref[...] * gate.astype(o_ref.dtype)).astype(o_ref.dtype)


def _gct_reduce_kernel(x_ref, s_ref, *, mode, after_relu, hw, hw_tile):
    """Two-pass fallback, pass 1: accumulate per-(n, c) sum over HW tiles."""
    t = pl.program_id(1)

    @pl.when(t == 0)
    def _init():
        s_ref[...] = jnp.zeros_like(s_ref)

    x = x_ref[...].astype(jnp.float32)                         # (1, C, hw_tile)
    if hw % hw_tile != 0:
        # Mask the ragged last tile BEFORE any arithmetic (padded region holds
        # unspecified VMEM contents).
        idx = t * hw_tile + jax.lax.broadcasted_iota(jnp.int32, x.shape, 2)
        x = jnp.where(idx < hw, x, 0.0)
    if mode == 'l2':
        part = jnp.sum(x * x, axis=-1, keepdims=True)
    else:
        xin = x if after_relu else jnp.abs(x)
        part = jnp.sum(xin, axis=-1, keepdims=True)
    s_ref[...] += part


def _gct_scale_kernel(x_ref, gate_ref, o_ref):
    """Two-pass fallback, pass 2: out = x * gate (gate broadcast over HW)."""
    o_ref[...] = (x_ref[...] * gate_ref[...].astype(o_ref.dtype)).astype(o_ref.dtype)


# ---------------------------------------------------------------------------
# Sizing helpers
# ---------------------------------------------------------------------------

def _round_up(v, m):
    return -(-v // m) * m


def _vmem_capacity_bytes():
    try:
        info = pltpu.get_tpu_info()
        cap = getattr(info, "vmem_capacity_bytes", None)
        if cap:
            return int(cap)
    except Exception:
        pass
    return 64 << 20  # conservative (v7x-sized) default


def _vmem_limit(budget_bytes, vmem_cap):
    limit = max(int(budget_bytes) + (2 << 20), 32 << 20)
    return int(min(limit, vmem_cap - (16 << 20)))


def _choose_batch_block(n, per_image_bytes, max_block_bytes, target_bytes,
                        multi_core):
    """Pick how many images to pack per grid step (divisor of n)."""
    best_nb, best_key = 1, None
    for nb in range(1, n + 1):
        if n % nb:
            continue
        blk = nb * per_image_bytes
        if nb > 1 and blk > max_block_bytes:
            continue
        steps = n // nb
        if multi_core:
            min_steps = 4 if n >= 4 else (2 if n >= 2 else 1)
            key = (
                steps >= 2 or n < 2,             # keep both TensorCores busy
                blk >= target_bytes,             # amortize per-step overhead
                steps % 2 == 0 or n % 2 == 1,    # even split across 2 cores
                steps >= min_steps,
                min(blk, 2 * target_bytes),      # fatter DMAs, saturating
                steps,
            )
        else:
            key = (blk >= target_bytes, min(blk, 4 * target_bytes), -steps)
        if best_key is None or key > best_key:
            best_nb, best_key = nb, key
    return best_nb


# ---------------------------------------------------------------------------
# Wrapper
# ---------------------------------------------------------------------------

def gct_forward(x, alpha, gamma, beta, *, epsilon=1e-5, mode='l2',
                after_relu=False, max_block_bytes=None):
    """x: (N, C, H, W); alpha/gamma/beta: (1, C, 1, 1). Returns (N, C, H, W)."""
    if mode not in ('l1', 'l2'):
        raise ValueError(f"unknown mode: {mode}")
    N, C, H, W = x.shape
    HW = H * W
    itemsize = x.dtype.itemsize

    c_pad = _round_up(C, 8)
    hw_pad = _round_up(HW, 128)

    vmem_cap = _vmem_capacity_bytes()
    multi_core = vmem_cap < (100 << 20)           # 64 MiB parts have 2 TCs
    if max_block_bytes is None:
        max_block_bytes = (8 << 20) if multi_core else (20 << 20)
    target_bytes = 4 << 20

    # Padded VMEM footprint of one image's block (what actually lands in VMEM).
    per_image_vmem = c_pad * hw_pad * itemsize
    param_vmem = 2 * c_pad * 128 * 4              # (C, 3) block, double-buffered

    a = alpha.reshape(C).astype(jnp.float32)
    g = gamma.reshape(C).astype(jnp.float32)
    b = beta.reshape(C).astype(jnp.float32)
    x_in = x.reshape(N, C, HW)

    if per_image_vmem <= max_block_bytes:
        # ---------------- Single fused pass: whole (nb, C, HW) blocks -------
        nb = _choose_batch_block(N, per_image_vmem, max_block_bytes,
                                 target_bytes, multi_core)
        block_vmem = nb * per_image_vmem
        vmem_limit = _vmem_limit(4 * block_vmem + param_vmem, vmem_cap)

        params = jnp.stack([a, g, b], axis=-1)    # (C, 3)
        kernel = functools.partial(_gct_fused_kernel, epsilon=epsilon,
                                   mode=mode, after_relu=after_relu)
        out = pl.pallas_call(
            kernel,
            out_shape=jax.ShapeDtypeStruct((N, C, HW), x.dtype),
            grid=(N // nb,),
            in_specs=[
                pl.BlockSpec((nb, C, HW), lambda n: (n, 0, 0)),
                pl.BlockSpec((C, 3), lambda n: (0, 0)),
            ],
            out_specs=pl.BlockSpec((nb, C, HW), lambda n: (n, 0, 0)),
            compiler_params=pltpu.CompilerParams(
                dimension_semantics=("parallel",),
                vmem_limit_bytes=vmem_limit),
        )(x_in, params)
        return out.reshape(N, C, H, W)

    # ---------------- Two-pass fallback: HW-tiled reduce, then rescale ------
    col_bytes = c_pad * itemsize
    hw_tile = max(128, (max_block_bytes // col_bytes) // 128 * 128)
    hw_tile = min(hw_tile, hw_pad)
    n_tiles = pl.cdiv(HW, hw_tile)
    block_vmem = c_pad * hw_tile * itemsize
    vmem_limit = _vmem_limit(4 * block_vmem, vmem_cap)

    # Pass 1: per-(n, c) reduction over HW.
    sums = pl.pallas_call(
        functools.partial(_gct_reduce_kernel, mode=mode, after_relu=after_relu,
                          hw=HW, hw_tile=hw_tile),
        out_shape=jax.ShapeDtypeStruct((N, C, 1), jnp.float32),
        grid=(N, n_tiles),
        in_specs=[pl.BlockSpec((1, C, hw_tile), lambda n, t: (n, 0, t))],
        out_specs=pl.BlockSpec((1, C, 1), lambda n, t: (n, 0, 0)),
        compiler_params=pltpu.CompilerParams(
            dimension_semantics=("parallel", "arbitrary"),
            vmem_limit_bytes=vmem_limit),
    )(x_in)

    # Tiny per-(n, c) gate math in plain JAX (negligible vs the HBM streaming).
    s = sums[:, :, 0]                                           # (N, C) f32
    if mode == 'l2':
        embedding = jnp.sqrt(s + epsilon) * a[None, :]
        norm = g[None, :] * jax.lax.rsqrt(
            jnp.mean(embedding * embedding, axis=1, keepdims=True) + epsilon)
    else:
        embedding = s * a[None, :]
        norm = g[None, :] / (
            jnp.mean(jnp.abs(embedding), axis=1, keepdims=True) + epsilon)
    gate = (1.0 + jnp.tanh(embedding * norm + b[None, :]))[:, :, None]  # (N,C,1)

    # Pass 2: stream x again and apply the gate.
    out = pl.pallas_call(
        _gct_scale_kernel,
        out_shape=jax.ShapeDtypeStruct((N, C, HW), x.dtype),
        grid=(N, n_tiles),
        in_specs=[
            pl.BlockSpec((1, C, hw_tile), lambda n, t: (n, 0, t)),
            pl.BlockSpec((1, C, 1), lambda n, t: (n, 0, 0)),
        ],
        out_specs=pl.BlockSpec((1, C, hw_tile), lambda n, t: (n, 0, t)),
        compiler_params=pltpu.CompilerParams(
            dimension_semantics=("parallel", "parallel"),
            vmem_limit_bytes=vmem_limit),
    )(x_in, gate)
    return out.reshape(N, C, H, W)


# ---------------------------------------------------------------------------
# Pure-JAX reference (transcription of the PyTorch forward) for verification
# ---------------------------------------------------------------------------

def gct_reference(x, alpha, gamma, beta, *, epsilon=1e-5, mode='l2',
                  after_relu=False):
    if mode == 'l2':
        embedding = jnp.power(
            jnp.sum(x ** 2, axis=(2, 3), keepdims=True) + epsilon, 0.5) * alpha
        norm = gamma / jnp.power(
            jnp.mean(embedding ** 2, axis=1, keepdims=True) + epsilon, 0.5)
    else:  # 'l1'
        _x = x if after_relu else jnp.abs(x)
        embedding = jnp.sum(_x, axis=(2, 3), keepdims=True) * alpha
        norm = gamma / (jnp.mean(jnp.abs(embedding), axis=1, keepdims=True)
                        + epsilon)
    gate = 1.0 + jnp.tanh(embedding * norm + beta)
    return x * gate


if __name__ == "__main__":
    key = jax.random.PRNGKey(0)
    kx, ka, kg, kb, kx2, kp2, kx3 = jax.random.split(key, 7)

    # --- Case 1: small NCHW (C=4, HW=256), fused single-pass path. ----------
    N, C, H, W = 2, 4, 16, 16
    x = jax.random.normal(kx, (N, C, H, W), dtype=jnp.float32)
    alpha = 1.0 + 0.1 * jax.random.normal(ka, (1, C, 1, 1), dtype=jnp.float32)
    gamma = 0.5 * jax.random.normal(kg, (1, C, 1, 1), dtype=jnp.float32)
    beta = 0.1 * jax.random.normal(kb, (1, C, 1, 1), dtype=jnp.float32)

    out = jax.block_until_ready(gct_forward(x, alpha, gamma, beta))
    ref = gct_reference(x, alpha, gamma, beta)
    assert out.shape == (N, C, H, W)
    assert jnp.max(jnp.abs(out - ref)) < 2e-4, "l2 mismatch vs reference"

    out_l1 = jax.block_until_ready(gct_forward(x, alpha, gamma, beta, mode='l1'))
    ref_l1 = gct_reference(x, alpha, gamma, beta, mode='l1')
    assert jnp.max(jnp.abs(out_l1 - ref_l1)) < 2e-4, "l1 mismatch vs reference"

    # --- Case 2: ResNet-style shape (C=128, HW=49), fused path, no wrapper
    #     transpose anymore (sub-128 lane padding accepted inside VMEM). ------
    N2, C2, H2, W2 = 2, 128, 7, 7
    x2 = jax.random.normal(kx2, (N2, C2, H2, W2), dtype=jnp.float32)
    ka2, kg2, kb2 = jax.random.split(kp2, 3)
    alpha2 = 1.0 + 0.1 * jax.random.normal(ka2, (1, C2, 1, 1), dtype=jnp.float32)
    gamma2 = 0.5 * jax.random.normal(kg2, (1, C2, 1, 1), dtype=jnp.float32)
    beta2 = 0.1 * jax.random.normal(kb2, (1, C2, 1, 1), dtype=jnp.float32)

    out2 = jax.block_until_ready(gct_forward(x2, alpha2, gamma2, beta2))
    ref2 = gct_reference(x2, alpha2, gamma2, beta2)
    assert out2.shape == (N2, C2, H2, W2)
    assert jnp.max(jnp.abs(out2 - ref2)) < 2e-4, "C=128/HW=49 mismatch"

    # --- Case 3: force the HW-tiled two-pass fallback (ragged HW=200, tiny
    #     block cap) to exercise the oversized-image code path on small data. -
    N3, C3, H3, W3 = 2, 4, 10, 20
    x3 = jax.random.normal(kx3, (N3, C3, H3, W3), dtype=jnp.float32)
    out3 = jax.block_until_ready(
        gct_forward(x3, alpha, gamma, beta, max_block_bytes=4096))
    ref3 = gct_reference(x3, alpha, gamma, beta)
    assert jnp.max(jnp.abs(out3 - ref3)) < 2e-4, "two-pass l2 mismatch"

    out3_l1 = jax.block_until_ready(
        gct_forward(x3, alpha, gamma, beta, mode='l1', max_block_bytes=4096))
    ref3_l1 = gct_reference(x3, alpha, gamma, beta, mode='l1')
    assert jnp.max(jnp.abs(out3_l1 - ref3_l1)) < 2e-4, "two-pass l1 mismatch"

    print("KERNEL_OK")
</pallas_src>

<mosaic_0001>
module attributes {stable_mosaic.version = 11 : i64} {
  func.func @_gct_fused_kernel(%arg0: i32, %arg1: memref<1x4x256xf32, #tpu.memory_space<vmem>>, %arg2: memref<4x3xf32, #tpu.memory_space<vmem>>, %arg3: memref<1x4x256xf32, #tpu.memory_space<vmem>>) attributes {dimension_semantics = [#tpu.dimension_semantics<parallel>], iteration_bounds = array<i64: 2>, scalar_prefetch = 0 : i64, scratch_operands = 0 : i64, tpu.core_type = #tpu.core_type<tc>, window_params = [{transform_indices = @transform_0, window_bounds = array<i64: 1, 4, 256>}, {pipeline_mode = #tpu.pipeline_mode<synchronous>, transform_indices = @transform_1, window_bounds = array<i64: 4, 3>}, {transform_indices = @transform_2, window_bounds = array<i64: 1, 4, 256>}]} {
    %c0 = arith.constant 0 : index
    %c0_0 = arith.constant 0 : index
    %c0_1 = arith.constant 0 : index
    %0 = vector.load %arg1[%c0, %c0_0, %c0_1] : memref<1x4x256xf32, #tpu.memory_space<vmem>>, vector<1x4x256xf32>
    %1 = arith.mulf %0, %0 : vector<1x4x256xf32>
    %cst = arith.constant dense<0.000000e+00> : vector<1x4xf32>
    %2 = vector.multi_reduction <add>, %1, %cst [2] : vector<1x4x256xf32> to vector<1x4xf32>
    %3 = vector.shape_cast %2 : vector<1x4xf32> to vector<1x4x1xf32>
    %c0_2 = arith.constant 0 : index
    %c0_3 = arith.constant 0 : index
    %4 = vector.load %arg2[%c0_2, %c0_3] : memref<4x3xf32, #tpu.memory_space<vmem>>, vector<4x1xf32>
    %c0_4 = arith.constant 0 : index
    %c1 = arith.constant 1 : index
    %5 = vector.load %arg2[%c0_4, %c1] : memref<4x3xf32, #tpu.memory_space<vmem>>, vector<4x1xf32>
    %c0_5 = arith.constant 0 : index
    %c2 = arith.constant 2 : index
    %6 = vector.load %arg2[%c0_5, %c2] : memref<4x3xf32, #tpu.memory_space<vmem>>, vector<4x1xf32>
    %cst_6 = arith.constant 9.99999974E-6 : f32
    %7 = vector.broadcast %cst_6 : f32 to vector<1x4x1xf32>
    %8 = arith.addf %3, %7 : vector<1x4x1xf32>
    %9 = math.sqrt %8 : vector<1x4x1xf32>
    %10 = vector.shape_cast %4 : vector<4x1xf32> to vector<1x4x1xf32>
    %11 = arith.mulf %9, %10 : vector<1x4x1xf32>
    %12 = arith.mulf %11, %11 : vector<1x4x1xf32>
    %cst_7 = arith.constant dense<0.000000e+00> : vector<1x1xf32>
    %13 = vector.multi_reduction <add>, %12, %cst_7 [1] : vector<1x4x1xf32> to vector<1x1xf32>
    %14 = vector.shape_cast %13 : vector<1x1xf32> to vector<1x1x1xf32>
    %cst_8 = arith.constant 4.000000e+00 : f32
    %15 = vector.broadcast %cst_8 : f32 to vector<1x1x1xf32>
    %16 = arith.divf %14, %15 : vector<1x1x1xf32>
    %cst_9 = arith.constant 9.99999974E-6 : f32
    %17 = vector.broadcast %cst_9 : f32 to vector<1x1x1xf32>
    %18 = arith.addf %16, %17 : vector<1x1x1xf32>
    %19 = math.rsqrt %18 : vector<1x1x1xf32>
    %20 = vector.shape_cast %5 : vector<4x1xf32> to vector<1x4x1xf32>
    %21 = vector.broadcast %19 : vector<1x1x1xf32> to vector<1x4x1xf32>
    %22 = arith.mulf %20, %21 : vector<1x4x1xf32>
    %23 = arith.mulf %11, %22 : vector<1x4x1xf32>
    %24 = vector.shape_cast %6 : vector<4x1xf32> to vector<1x4x1xf32>
    %25 = arith.addf %23, %24 : vector<1x4x1xf32>
    %26 = math.tanh %25 : vector<1x4x1xf32>
    %cst_10 = arith.constant 1.000000e+00 : f32
    %27 = vector.broadcast %cst_10 : f32 to vector<1x4x1xf32>
    %28 = arith.addf %27, %26 : vector<1x4x1xf32>
    %c0_11 = arith.constant 0 : index
    %c0_12 = arith.constant 0 : index
    %c0_13 = arith.constant 0 : index
    %29 = vector.load %arg1[%c0_11, %c0_12, %c0_13] : memref<1x4x256xf32, #tpu.memory_space<vmem>>, vector<1x4x256xf32>
    %30 = vector.broadcast %28 : vector<1x4x1xf32> to vector<1x4x256xf32>
    %31 = arith.mulf %29, %30 : vector<1x4x256xf32>
    %c0_14 = arith.constant 0 : index
    %c0_15 = arith.constant 0 : index
    %c0_16 = arith.constant 0 : index
    %32 = vector.load %arg3[%c0_14, %c0_15, %c0_16] : memref<1x4x256xf32, #tpu.memory_space<vmem>>, vector<1x4x256xf32>
    tpu.vector_store %arg3[%c0_14, %c0_15, %c0_16], %31 {strides = array<i32>} : memref<1x4x256xf32, #tpu.memory_space<vmem>>, vector<1x4x256xf32>,
    return
  }
  func.func @transform_0(%arg0: i32) -> (i32, i32, i32) {
    %c0_i32 = arith.constant 0 : i32
    %c0_i32_0 = arith.constant 0 : i32
    %c0_i32_1 = arith.constant 0 : i32
    return %arg0, %c0_i32, %c0_i32_0 : i32, i32, i32
  }
  func.func @transform_1(%arg0: i32) -> (i32, i32) {
    %c0_i32 = arith.constant 0 : i32
    %c0_i32_0 = arith.constant 0 : i32
    %c0_i32_1 = arith.constant 0 : i32
    return %c0_i32, %c0_i32_0 : i32, i32
  }
  func.func @transform_2(%arg0: i32) -> (i32, i32, i32) {
    %c0_i32 = arith.constant 0 : i32
    %c0_i32_0 = arith.constant 0 : i32
    %c0_i32_1 = arith.constant 0 : i32
    return %arg0, %c0_i32, %c0_i32_0 : i32, i32, i32
  }
}

</mosaic_0001>

<bundles_post_ra>
// kernel: tpu_custom_call.1
= control target key start
LH: loop header
LB: loop body
LE: loop exit
PB: predicated region body
PF: predicated region fallthrough
CT: control target
= control target key end

     0   :  { %7 = vsyncpa [#allocation3], 0  ;;  %s784_s0 = inlined_call_operand.hbm [shape: f32[2,4,256], index: 0, kind: input, shape index: {}]   ;;  %s785_s1 = inlined_call_operand.hbm [shape: f32[4,3], index: 1, kind: input, shape index: {}]   ;;  %s786_s2 = inlined_call_operand.hbm [shape: f32[2,4,256], index: 2, kind: output, shape index: {}]  }
   0x1   :  { %9 = vsyncpa [#allocation3 + $0x1], 0 }
   0x2   :  { %10 = vsyncpa [#allocation6], 0 }
   0x3   :  { %11 = vsyncpa [#allocation4], 0 }
   0x4   :  { %13 = vsyncpa [#allocation4 + $0x1], 0  ;;  %s574_s9 = smov 0   ;;  %s576_s10 = smov 0  }
   0x5   :  { %s578_s11 = smov 0   ;;  %s580_s12 = smov 0  }
   0x6 LB: > { %s595_s13 = sadd.s32 4294967295, %s549_s12   ;;  %s333_s14 = sadd.s32 4294967294, %s549_s12   ;;  %s549_s12 = sphi %s580_s12, %s810_s12   ;;  %s545_s11 = sphi %s578_s11, %s809_s11   ;;  %s541_s10 = sphi %s576_s10, %s808_s10   ;;  %s537_s9 = sphi %s574_s9, %s807_s9  }
   0x7   : > { %p39_p0 = scmp.ne.s32.totalorder %s541_s10, %s537_s9  ;;  %p787_p1 = scmp.eq.s32.totalorder %s595_s13, 0 }
   0x8   : > { %p90_p3 = scmp.eq.s32.totalorder %s333_s14, 1  ;;  %p334_p5 = scmp.ge.s32.totalorder %s549_s12, 1 }
   0x9   : > { %p604_p4 = por %p787_p1, %p39_p0  ;;  %p97_p7 = scmp.lt.s32.totalorder %s549_s12, 3 }
   0xa   : > { %p609_p6 = por %p90_p3, %p39_p0  ;;  %s551_s18 = smov [#allocation5]  }
   0xb   : > { %s790_s15 = scalar_select %p604_p4, 1, 0 }
   0xc   : > { %s791_s16 = scalar_select %p609_p6, 1, 0 }
   0xd   : > { %p614_p8 = pnand %p334_p5, %p97_p7  ;;  %s110_s19 = sshll.u32 %s551_s18, 4  ;;  %s111_s19 = int_to_ptr.vmem [resolvable:$true] %s110_s19 }
   0xe   : > { %s622_s20 = sadd.s32 1, %s549_s12   ;;  %s26_s24 = sadd.s32 1, %s545_s11 }
   0xf   : > { %s792_s17 = scalar_select %p614_p8, 1, 0 }
  0x10   : > { %p359_p10 = pneg %p614_p8  ;;  %s23_s22 = ssub.s32 %s549_s12, %s622_s20 }
  0x11   : > { %p632_p12 = scmp.eq.s32.totalorder %s23_s22, 0  ;;  %s421_s27 = scalar_lea.hbm %s785_s1, 64 }
  0x12   : > { %p626_p11 = pnand %p359_p10, %p787_p1  ;;  %p422_p0 = scmp.ne.s32.totalorder %s785_s1, %s421_s27 }
  0x13   : > { %s794_s23 = scalar_select %p632_p12, 1, 0 }
  0x14   : > { %p423_p3 = pneg %p626_p11  ;;  %p428_p10 = scmp.lt.u32.totalorder %s421_s27, %s785_s1 }
  0x16   : > { %p424_p5 = pnand %p423_p3, %p422_p0 }
  0x18   : > { %p425_p7 = pneg %p424_p5 }
  0x1a   : > { %p430_p9 = pnand %p428_p10, %p425_p7 }
  0x1c   : > { %433 = shalt.err (!%p430_p9)
}
  0x1d   : > { %s434_s4 = scalar_lea.vmem %s111_s19, 64  ;;  %p442_p6 = scmp.lt.s32.totalorder %s111_s19, %s111_s19 }
  0x1e   : > { %p435_p1 = scmp.ne.s32.totalorder %s111_s19, %s434_s4  ;;  %p443_p4 = scmp.lt.s32.totalorder %s434_s4, %s434_s4 }
  0x20   : > { %p437_p2 = pnand %p435_p1, %p423_p3  ;;  %p444_p8 = por %p443_p4, %p442_p6 }
  0x22   : > { %p438_p13 = pneg %p437_p2 }
  0x24   : > { %p445_p12 = pnand %p444_p8, %p438_p13 }
  0x26   : > { %448 = shalt.err (!%p445_p12)
}
  0x27   : > { %362 = dma.hbm_to_vmem [thread:$0]  (!%p626_p11), %s785_s1, 64, %s111_s19, [#allocation6]  }
  0x28   : > { %p795_p1 = scmp.ne.s32.totalorder %s794_s23, 0  ;;  %p34_p2 = scmp.eq.s32.totalorder %s549_s12, 0 }
  0x29   : > { %p796_p4 = scmp.ne.s32.totalorder %s545_s11, %s541_s10  ;;  %p797_p6 = scmp.eq.s32.totalorder %s595_s13, 1 }
  0x2a   : > { %s658_s7 = scalar_select %p795_p1, %s545_s11, %s26_s24  }
  0x2b   : > { %p666_p8 = por %p797_p6, %p796_p4  ;;  %p372_p9 = scmp.lt.s32.totalorder %s549_s12, 2 }
  0x2c   : > { %s121_s14 = sand.u32 1, %s545_s11   ;;  %p799_p12 = pmov %p796_p4 }
  0x2d   : > { %s337_s18 = sshll.u32 %s121_s14, 3  ;;  %s349_s21 = sshll.u32 %s549_s12, 7 }
  0x2e   : > { %p35_p13 = por %p34_p2, %p799_p12  ;;  %s679_s19 = scalar_lea.hbm %s784_s0, %s349_s21 }
  0x2f   : > { %s125_s23 = scalar_lea.vmem [#allocation2], %s337_s18  ;;  %s122_s27 = scalar_lea.sflag [#allocation3], %s121_s14 }
  0x30   : > { %s133_s24 = sshll.u32 %s125_s23, 4  ;;  %p681_p11 = pnand %p372_p9, %p35_p13  ;;  %s685_s24 = int_to_ptr.vmem [resolvable:$true] %s133_s24 }
  0x31   : > { %s449_s28 = scalar_lea.hbm %s679_s19, 128  ;;  %s454_s3 = scalar_lea.hbm %s784_s0, 256 }
  0x32   : > { %p450_p0 = scmp.ne.s32.totalorder %s679_s19, %s449_s28  ;;  %p451_p3 = pneg %p681_p11 }
  0x33   : > { %p455_p10 = scmp.lt.u32.totalorder %s679_s19, %s784_s0  ;;  %p456_p1 = scmp.lt.u32.totalorder %s454_s3, %s449_s28 }
  0x34   : > { %p452_p5 = pnand %p451_p3, %p450_p0  ;;  %p458_p4 = scmp.lt.u32.totalorder %s449_s28, %s679_s19 }
  0x35   : > { %p457_p2 = por %p456_p1, %p455_p10 }
  0x36   : > { %p453_p7 = pneg %p452_p5 }
  0x37   : > { %p459_p6 = por %p458_p4, %p457_p2 }
  0x39   : > { %p460_p9 = pnand %p459_p6, %p453_p7 }
  0x3b   : > { %463 = shalt.err (!%p460_p9)
}
  0x3c   : > { %s464_s6 = scalar_lea.vmem %s685_s24, 128  ;;  %s552_s14 = smov [#allocation2]  }
  0x3d   : > { %p465_p12 = scmp.ne.s32.totalorder %s685_s24, %s464_s6  ;;  %s469_s18 = sshll.u32 %s552_s14, 4  ;;  %s470_s18 = int_to_ptr.vmem [resolvable:$false] %s469_s18 }
  0x3e   : > { %s471_s21 = scalar_lea.vmem %s470_s18, 256  ;;  %p472_p5 = scmp.lt.s32.totalorder %s685_s24, %s470_s18 }
  0x3f   : > { %p467_p13 = pnand %p465_p12, %p451_p3  ;;  %p473_p10 = scmp.lt.s32.totalorder %s471_s21, %s464_s6 }
  0x41   : > { %p468_p0 = pneg %p467_p13  ;;  %p474_p1 = por %p473_p10, %p472_p5 }
  0x43   : > { %p475_p2 = pnand %p474_p1, %p468_p0 }
  0x45   : > { %478 = shalt.err (!%p475_p2)
}
  0x46   : > { %366 = dma.hbm_to_vmem [thread:$0]  (!%p681_p11), %s679_s19, 128, %s685_s24, %s122_s27  }
  0x47   : > { %p801_p7 = scmp.ne.s32.totalorder %s792_s17, 0 }
  0x48   : > { %s715_s22 = sand.u32 (!%p801_p7), 1, %s541_s10   ;;  %p802_p3 = scmp.ne.s32.totalorder (!%p801_p7), %s790_s15, 0 }
  0x49   : > { %142 = sbr.rel (%p801_p7) target bundleno = 680 (0x2a8), region = 28  ;;  %s341_s25 = sshll.u32 (!%p801_p7), %s715_s22, 3 }
  0x4a   : > { %s145_s23 = scalar_lea.sflag (!%p801_p7), [#allocation3], %s715_s22  ;;  %s148_s28 = scalar_lea.vmem (!%p801_p7), [#allocation2], %s341_s25 }
  0x50   : > { %524 = dma.done.wait (%p802_p3), %s145_s23, 128  }
  0x51   : > { %526 = vsyncadd (%p802_p3), %s145_s23, 4294967168  ;;  %p803_p11 = scmp.eq.s32.totalorder %s595_s13, 0 }
  0x53   : > { %528 = dma.done.wait (%p803_p11), [#allocation6], 64   ;;  %p804_p4 = pmov %p803_p11 }
  0x54   : > { %v729_v0 = vld [vmem:[%s148_s28] sm:$0xff]  ;;  %vm178_vm0 = vcmask 1043456   ;;  %v184_v10 = vld [vmem:[#allocation5] sm:$0xf]  ;;  %vm195_vm3 = vcmask 3072   ;;  %s553_s15 = smov 1   ;;  %v231_v37 = vlaneseq }
  0x55   : > { %530 = vsyncadd (%p804_p4), [#allocation6], 4294967232  ;;  %v174_v1 = vmul.f32 %v729_v0, %v729_v0  ;;  %s554_s17 = smov 127   ;;  %s555_s19 = smov 126   ;;  %v556_v28 = vmov 0  }
  0x56   : > { %413 = vset.pattern.permute.xlu1 %v556_v28  ;;  %414 = vset.pattern.permute.xlu0 %v556_v28  ;;  %v557_v35 = vmov 839922192   ;;  %v232_v39 = vshrl.u32 %v231_v37, 7  ;;  %s350_s24 = sshll.u32 %s595_s13, 7  ;;  %s172_s26 = scalar_lea.vmem [#allocation7], %s341_s25 }
  0x57   : > { %v176_v2 = vcombine.high %v174_v1, %v174_v1  ;;  %v179_v3 = vsel %vm178_vm0, %v174_v1, 0.0  ;;  %v229_v36 = vunpack.c.l.s4 %v557_v35  ;;  %s253_s27 = sshll.u32 %s172_s26, 4  ;;  %s740_s3 = scalar_lea.hbm %s786_s2, %s350_s24  ;;  %s742_s27 = int_to_ptr.vmem [resolvable:$true] %s253_s27 }
  0x58   : > { %s239_s4 = scalar_lea.sflag [#allocation4], %s715_s22  ;;  %s479_s5 = scalar_lea.vmem %s742_s27, 128 }
  0x59   : > { %v180_v4 = vsel %vm178_vm0, %v176_v2, 0.0  ;;  %v230_v38 = vunpack.c.0.s8 %v229_v36  ;;  %p480_p6 = scmp.ne.s32.totalorder %s742_s27, %s479_s5  ;;  %s558_s13 = smov [#allocation7]  }
  0x5a   : > { %v181_v5 = vadd.f32 %v180_v4, %v179_v3  ;;  %s483_s6 = sshll.u32 %s558_s13, 4  ;;  %s484_s6 = int_to_ptr.vmem [resolvable:$false] %s483_s6 }
  0x5b   : > { %v233_v40 = vsub.s32 %v230_v38, %v232_v39  ;;  %p481_p9 = pnand %p480_p6, %p666_p8  ;;  %s485_s14 = scalar_lea.vmem %s484_s6, 256 }
  0x5c   : > { %182 = vadd.xlane.f32.xlu0 %v181_v5  ;;  %p486_p13 = scmp.lt.s32.totalorder %s742_s27, %s484_s6  ;;  %p487_p0 = scmp.lt.s32.totalorder %s485_s14, %s479_s5 }
  0x5d   : > { %p482_p12 = pneg %p481_p9 }
  0x5e   : > { %p488_p5 = por %p487_p0, %p486_p13 }
  0x60   : > { %p489_p10 = pnand %p488_p5, %p482_p12 }
  0xe9   : > { %v183_v6 = vpop.xlane.xlu0 %182 }
  0xea   : > { %v185_v7 = vadd.f32 1e-05, %v183_v6 }
  0xec   : > { %415 = vrsqrt.f32 %v185_v7  ;;  %vm188_vm1 = vcmp.eq.f32.partialorder %v185_v7, inf  ;;  %v191_v11 = vand.u32 2147483648, %v185_v7  ;;  %vm190_vm2 = vcmp.eq.f32.partialorder %v185_v7, 0.0 }
  0xf6   : > { %v416_v8 = vpop.eup %415 }
  0xf7   : > { %v187_v9 = vmul.f32 %v416_v8, %v185_v7 }
  0xf9   : > { %v189_v12 = vsel %vm188_vm1, %v185_v7, %v187_v9 }
  0xfa   : > { %v192_v13 = vsel %vm190_vm2, %v191_v11, %v189_v12 }
  0xfb   : > { %v193_v14 = vmul.f32 %v192_v13, %v184_v10 }
  0xfd   : > { %v194_v15 = vmul.f32 %v193_v14, %v193_v14 }
  0xff   : > { %v196_v16 = vsel %vm195_vm3, %v194_v15, 0.0 }
 0x100   : > { %v197_v17 = vrot.slane %v196_v16, 4 }
 0x102   : > { %v198_v18 = vadd.f32 %v197_v17, %v196_v16 }
 0x104   : > { %v199_v19 = vrot.slane %v198_v18, 2 }
 0x106   : > { %v200_v20 = vadd.f32 %v199_v19, %v198_v18 }
 0x108   : > { %v201_v21 = vrot.slane %v200_v20, 1 }
 0x10a   : > { %v202_v22 = vadd.f32 %v201_v21, %v200_v20 }
 0x10c   : > { %v204_v23 = vmul.f32 0.25, %v202_v22 }
 0x10e   : > { %v205_v24 = vadd.f32 1e-05, %v204_v23 }
 0x110   : > { %417 = vrsqrt.f32 %v205_v24 }
 0x11a   : > { %v418_v25 = vpop.eup %417 }
 0x11b   : > { %208 = vrot.lane.b32.xlu0 %v418_v25, %s553_s15 }
 0x18d   : > { %v209_v26 = vpop.permute.xlu0 %208 }
 0x18e   : > { %v211_v27 = vmul.f32 %v209_v26, %v184_v10 }
 0x190   : > { %213 = vrot.lane.b32.xlu1 %v211_v27, %s554_s17 }
 0x194   : > { %218 = vrot.lane.b32.xlu1 %v184_v10, %s555_s19 }
 0x202   : > { %v214_v29 = vpop.permute.xlu1 %213 }
 0x203   : > { %v216_v30 = vmul.f32 %v214_v29, %v193_v14 }
 0x206   : > { %v219_v31 = vpop.permute.xlu1 %218 }
 0x207   : > { %v221_v32 = vadd.f32 %v219_v31, %v216_v30 }
 0x209   : > { %419 = vtanh.f32 %v221_v32 }
 0x213   : > { %v420_v33 = vpop.eup %419 }
 0x214   : > { %v223_v34 = vadd.f32 1.0, %v420_v33 }
 0x216   : > { %226 = vperm.xlu1 %413, %v223_v34  }
 0x295   : > { %v227_v41 = vpop.permute.xlu1 %226 }
 0x296   : > { %v234_v42 = vrot.slane %v227_v41, %v233_v40 }
 0x298   : > { %v236_v43 = vmul.f32 %v234_v42, %v729_v0 }
 0x29a   : > { %237 = vst [vmem:[%s172_s26] sm:$0xff] %v236_v43 }
 0x29b   : > { %492 = shalt.err (!%p489_p10)
}
 0x29c   : > { %s493_s18 = scalar_lea.hbm %s740_s3, 128  ;;  %s497_s25 = scalar_lea.hbm %s786_s2, 256 }
 0x29d   : > { %p494_p1 = scmp.ne.s32.totalorder %s740_s3, %s493_s18  ;;  %p498_p3 = scmp.lt.u32.totalorder %s740_s3, %s786_s2 }
 0x29e   : > { %p499_p11 = scmp.lt.u32.totalorder %s497_s25, %s493_s18  ;;  %p501_p6 = scmp.lt.u32.totalorder %s493_s18, %s740_s3 }
 0x29f   : > { %p495_p2 = pnand %p494_p1, %p666_p8 }
 0x2a0   : > { %p500_p4 = por %p499_p11, %p498_p3 }
 0x2a1   : > { %p496_p7 = pneg %p495_p2 }
 0x2a2   : > { %p502_p9 = por %p501_p6, %p500_p4 }
 0x2a4   : > { %p503_p12 = pnand %p502_p9, %p496_p7 }
 0x2a6   : > { %506 = shalt.err (!%p503_p12)
}
 0x2a7   : > { %357 = dma.vmem_to_hbm [thread:$0]  (%p666_p8), %s742_s27, 128, %s740_s3, %s239_s4  }
 0x2a8 PF: > { %s265_s15 = sand.u32 1, %s537_s9   ;;  %p805_p13 = scmp.ne.s32.totalorder %s791_s16, 0 }
 0x2a9   : > { %p806_p0 = scmp.ge.s32.totalorder %s549_s12, 2  ;;  %s266_s17 = scalar_lea.sflag [#allocation4], %s265_s15 }
 0x2ab   : > { %p368_p5 = pnand %p806_p0, %p805_p13 }
 0x2ad   : > { %532 = dma.done.wait (!%p368_p5), %s266_s17, 128  }
 0x2ae   : > { %534 = vsyncadd (!%p368_p5), %s266_s17, 4294967168  ;;  %p16_p10 = scmp.ge.s32.totalorder %s622_s20, 4   ;;  %s807_s9 = smov %s541_s10 }
 0x2af   : > { %s808_s10 = smov %s545_s11  ;;  %s809_s11 = smov %s658_s7 }
 0x2b0   : > { %s810_s12 = smov %s622_s20  ;;  %18 = sbr.rel (!%p16_p10) target bundleno = 6 (0x6), region = 77 }
 0x2b7   :  { %271 = vsyncpa [#allocation3], 1 }
 0x2b8   :  { %273 = vsyncpa [#allocation3 + $0x1], 1 }
 0x2b9   :  { %274 = vsyncpa [#allocation6], 1 }
 0x2ba   :  { %275 = vsyncpa [#allocation4], 1 }
 0x2bb   :  { %277 = vsyncpa [#allocation4 + $0x1], 1 }

</bundles_post_ra>
